<compile_context>
chip_gen: v5e
topology: v5e:2x2
jax: 0.10.0
libtpu: 0.0.40
codegen_flags: <defaults>
</compile_context>

<pallas_src>
import jax
import jax.numpy as jnp
from jax import lax
from jax.experimental import pallas as pl
from jax.experimental.pallas import tpu as pltpu


def rnn_recursive_kernel(xp_ref, h0_ref, whh_ref, bias_ref, hs_ref):
    """Sequential Elman recurrence, fully VMEM-resident, single invocation.

    xp_ref   : (T, B, H)  precomputed  past_features @ W_ih + (b_ih + b_hh)
    h0_ref   : (1, H)     learned initial state
    whh_ref  : (H, H)     recurrent weight (pre-transposed)
    bias_ref : (1, H)     b_ih + b_hh   (used alone for the zero-input steps)
    hs_ref   : (fh, B, H) OUTPUT: hidden states of the forecast horizon
    """
    fh, B, H = hs_ref.shape
    T = xp_ref.shape[0]

    whh = whh_ref[...]                                   # resident (H, H)
    bias = bias_ref[...]                                 # (1, H)
    h0 = jnp.broadcast_to(h0_ref[...], (B, H))           # (B, H)

    # --- encode past horizon: h_t = tanh(xp[t] + h_{t-1} @ W_hh) -----------
    def past_step(t, h):
        return jnp.tanh(xp_ref[t] +
                        jnp.dot(h, whh, preferred_element_type=jnp.float32))

    h = lax.fori_loop(0, T, past_step, h0, unroll=True)

    # --- recursive forecast: zero inputs => bias + recurrent term only ------
    def future_step(t, h):
        h_new = jnp.tanh(bias +
                         jnp.dot(h, whh, preferred_element_type=jnp.float32))
        hs_ref[t] = h_new                                # store dynamic row t
        return h_new

    lax.fori_loop(0, fh, future_step, h, unroll=True)


def rnn_recursive_forward(past_features, params, forecast_horizon):
    """past_features: (T, B, U) float32. Returns forecast (fh, B, Y)."""
    T, B, U = past_features.shape
    H = params["w_hh"].shape[0]
    fh = forecast_horizon

    # Pre-sum the two RNN biases and hoist the input projection (no sequential
    # dependency) into one batched XLA matmul; no concat with zero inputs.
    bias = params["b_ih"] + params["b_hh"]                               # (1, H)
    xp = jnp.einsum("tbu,uh->tbh", past_features, params["w_ih"]) + bias  # (T,B,H)

    vmem = pl.BlockSpec(memory_space=pltpu.MemorySpace.VMEM)
    hs = pl.pallas_call(
        rnn_recursive_kernel,
        out_shape=jax.ShapeDtypeStruct((fh, B, H), jnp.float32),
        in_specs=[vmem, vmem, vmem, vmem],
        out_specs=vmem,
    )(xp, params["h0"], params["w_hh"], bias)            # (fh, B, H)

    # Decode only the last fh states: one lane-dense XLA matmul outside the
    # kernel (avoids T_total masked Y=3-lane stores inside the kernel).
    return hs @ params["w_out"] + params["b_out"][0]     # (fh, B, Y)


def reference_forward(past_features, params, forecast_horizon):
    """Pure-JAX reference (mirrors torch nn.RNN tanh + Linear)."""
    fh = forecast_horizon
    future_zeros = jnp.zeros_like(past_features)[:fh]
    features = jnp.concatenate([past_features, future_zeros], axis=0)
    B = features.shape[1]
    h = jnp.broadcast_to(params["h0"], (B, params["h0"].shape[1]))

    def step(h, x):
        h_new = jnp.tanh(x @ params["w_ih"] + params["b_ih"][0]
                         + h @ params["w_hh"] + params["b_hh"][0])
        return h_new, h_new

    _, states = jax.lax.scan(step, h, features)          # (T+fh, B, H)
    future_states = states[-fh:]
    return future_states @ params["w_out"] + params["b_out"][0]


def make_params(key, n_features_U, n_state_neurons, n_features_Y):
    ks = jax.random.split(key, 7)
    H, U, Y = n_state_neurons, n_features_U, n_features_Y
    scale = 1.0 / jnp.sqrt(jnp.float32(H))
    uni = lambda k, shape: jax.random.uniform(k, shape, jnp.float32, -scale, scale)
    return {
        # stored pre-transposed vs. PyTorch: W_ih torch (H,U) -> here (U,H)
        "w_ih": uni(ks[0], (U, H)),
        "w_hh": uni(ks[1], (H, H)),
        "b_ih": uni(ks[2], (1, H)),
        "b_hh": uni(ks[3], (1, H)),
        # Linear: torch weight (Y,H) -> here (H,Y)
        "w_out": uni(ks[4], (H, Y)),
        "b_out": uni(ks[5], (1, Y)),
        # init_state parameter (1, H); torch used rand -> uniform [0,1)
        "h0": jax.random.uniform(ks[6], (1, H), jnp.float32),
    }


if __name__ == "__main__":
    # Small shapes consistent with the module's forward
    T = 8                 # past horizon (seq length)
    B = 2                 # batch
    n_features_U = 4
    n_state_neurons = 32
    n_features_Y = 3
    forecast_horizon = 4  # must be <= T (zeros_like(past)[:fh])

    key = jax.random.PRNGKey(0)
    k_x, k_p = jax.random.split(key)
    past_features = jax.random.normal(k_x, (T, B, n_features_U), jnp.float32)
    params = make_params(k_p, n_features_U, n_state_neurons, n_features_Y)

    forecast = rnn_recursive_forward(past_features, params, forecast_horizon)
    forecast = jax.block_until_ready(forecast)

    ref = reference_forward(past_features, params, forecast_horizon)
    assert forecast.shape == (forecast_horizon, B, n_features_Y)
    assert jnp.allclose(forecast, ref, atol=1e-5, rtol=1e-5)

    print("KERNEL_OK")
</pallas_src>

<mosaic_0001>
module attributes {stable_mosaic.version = 11 : i64} {
  func.func @rnn_recursive_kernel(%arg0: memref<8x2x32xf32, #tpu.memory_space<vmem>>, %arg1: memref<1x32xf32, #tpu.memory_space<vmem>>, %arg2: memref<32x32xf32, #tpu.memory_space<vmem>>, %arg3: memref<1x32xf32, #tpu.memory_space<vmem>>, %arg4: memref<4x2x32xf32, #tpu.memory_space<vmem>>) attributes {dimension_semantics = [], scalar_prefetch = 0 : i64, scratch_operands = 0 : i64, tpu.core_type = #tpu.core_type<tc>} {
    %c0 = arith.constant 0 : index
    %c0_0 = arith.constant 0 : index
    %0 = vector.load %arg2[%c0, %c0_0] : memref<32x32xf32, #tpu.memory_space<vmem>>, vector<32x32xf32>
    %c0_1 = arith.constant 0 : index
    %c0_2 = arith.constant 0 : index
    %1 = vector.load %arg3[%c0_1, %c0_2] : memref<1x32xf32, #tpu.memory_space<vmem>>, vector<1x32xf32>
    %c0_3 = arith.constant 0 : index
    %c0_4 = arith.constant 0 : index
    %2 = vector.load %arg1[%c0_3, %c0_4] : memref<1x32xf32, #tpu.memory_space<vmem>>, vector<1x32xf32>
    %3 = vector.shape_cast %2 : vector<1x32xf32> to vector<1x32xf32>
    %4 = vector.broadcast %3 : vector<1x32xf32> to vector<2x32xf32>
    %c0_i32 = arith.constant 0 : i32
    %5 = arith.index_cast %c0_i32 : i32 to index
    %c0_5 = arith.constant 0 : index
    %c0_6 = arith.constant 0 : index
    %6 = vector.load %arg0[%5, %c0_5, %c0_6] : memref<8x2x32xf32, #tpu.memory_space<vmem>>, vector<1x2x32xf32>
    %7 = vector.shape_cast %6 : vector<1x2x32xf32> to vector<2x32xf32>
    %cst = arith.constant dense<0.000000e+00> : vector<2x32xf32>
    %8 = tpu.matmul %4, %0, %cst {dimension_numbers = #tpu.dot_dimension_numbers<[1], [0], [0], [1], [0, 0, 1, 1], [], []>} : vector<2x32xf32>, vector<32x32xf32>, vector<2x32xf32> -> vector<2x32xf32>
    %9 = arith.addf %7, %8 : vector<2x32xf32>
    %10 = math.tanh %9 : vector<2x32xf32>
    %c1_i32 = arith.constant 1 : i32
    %11 = arith.index_cast %c1_i32 : i32 to index
    %c0_7 = arith.constant 0 : index
    %c0_8 = arith.constant 0 : index
    %12 = vector.load %arg0[%11, %c0_7, %c0_8] : memref<8x2x32xf32, #tpu.memory_space<vmem>>, vector<1x2x32xf32>
    %13 = vector.shape_cast %12 : vector<1x2x32xf32> to vector<2x32xf32>
    %cst_9 = arith.constant dense<0.000000e+00> : vector<2x32xf32>
    %14 = tpu.matmul %10, %0, %cst_9 {dimension_numbers = #tpu.dot_dimension_numbers<[1], [0], [0], [1], [0, 0, 1, 1], [], []>} : vector<2x32xf32>, vector<32x32xf32>, vector<2x32xf32> -> vector<2x32xf32>
    %15 = arith.addf %13, %14 : vector<2x32xf32>
    %16 = math.tanh %15 : vector<2x32xf32>
    %c2_i32 = arith.constant 2 : i32
    %17 = arith.index_cast %c2_i32 : i32 to index
    %c0_10 = arith.constant 0 : index
    %c0_11 = arith.constant 0 : index
    %18 = vector.load %arg0[%17, %c0_10, %c0_11] : memref<8x2x32xf32, #tpu.memory_space<vmem>>, vector<1x2x32xf32>
    %19 = vector.shape_cast %18 : vector<1x2x32xf32> to vector<2x32xf32>
    %cst_12 = arith.constant dense<0.000000e+00> : vector<2x32xf32>
    %20 = tpu.matmul %16, %0, %cst_12 {dimension_numbers = #tpu.dot_dimension_numbers<[1], [0], [0], [1], [0, 0, 1, 1], [], []>} : vector<2x32xf32>, vector<32x32xf32>, vector<2x32xf32> -> vector<2x32xf32>
    %21 = arith.addf %19, %20 : vector<2x32xf32>
    %22 = math.tanh %21 : vector<2x32xf32>
    %c3_i32 = arith.constant 3 : i32
    %23 = arith.index_cast %c3_i32 : i32 to index
    %c0_13 = arith.constant 0 : index
    %c0_14 = arith.constant 0 : index
    %24 = vector.load %arg0[%23, %c0_13, %c0_14] : memref<8x2x32xf32, #tpu.memory_space<vmem>>, vector<1x2x32xf32>
    %25 = vector.shape_cast %24 : vector<1x2x32xf32> to vector<2x32xf32>
    %cst_15 = arith.constant dense<0.000000e+00> : vector<2x32xf32>
    %26 = tpu.matmul %22, %0, %cst_15 {dimension_numbers = #tpu.dot_dimension_numbers<[1], [0], [0], [1], [0, 0, 1, 1], [], []>} : vector<2x32xf32>, vector<32x32xf32>, vector<2x32xf32> -> vector<2x32xf32>
    %27 = arith.addf %25, %26 : vector<2x32xf32>
    %28 = math.tanh %27 : vector<2x32xf32>
    %c4_i32 = arith.constant 4 : i32
    %29 = arith.index_cast %c4_i32 : i32 to index
    %c0_16 = arith.constant 0 : index
    %c0_17 = arith.constant 0 : index
    %30 = vector.load %arg0[%29, %c0_16, %c0_17] : memref<8x2x32xf32, #tpu.memory_space<vmem>>, vector<1x2x32xf32>
    %31 = vector.shape_cast %30 : vector<1x2x32xf32> to vector<2x32xf32>
    %cst_18 = arith.constant dense<0.000000e+00> : vector<2x32xf32>
    %32 = tpu.matmul %28, %0, %cst_18 {dimension_numbers = #tpu.dot_dimension_numbers<[1], [0], [0], [1], [0, 0, 1, 1], [], []>} : vector<2x32xf32>, vector<32x32xf32>, vector<2x32xf32> -> vector<2x32xf32>
    %33 = arith.addf %31, %32 : vector<2x32xf32>
    %34 = math.tanh %33 : vector<2x32xf32>
    %c5_i32 = arith.constant 5 : i32
    %35 = arith.index_cast %c5_i32 : i32 to index
    %c0_19 = arith.constant 0 : index
    %c0_20 = arith.constant 0 : index
    %36 = vector.load %arg0[%35, %c0_19, %c0_20] : memref<8x2x32xf32, #tpu.memory_space<vmem>>, vector<1x2x32xf32>
    %37 = vector.shape_cast %36 : vector<1x2x32xf32> to vector<2x32xf32>
    %cst_21 = arith.constant dense<0.000000e+00> : vector<2x32xf32>
    %38 = tpu.matmul %34, %0, %cst_21 {dimension_numbers = #tpu.dot_dimension_numbers<[1], [0], [0], [1], [0, 0, 1, 1], [], []>} : vector<2x32xf32>, vector<32x32xf32>, vector<2x32xf32> -> vector<2x32xf32>
    %39 = arith.addf %37, %38 : vector<2x32xf32>
    %40 = math.tanh %39 : vector<2x32xf32>
    %c6_i32 = arith.constant 6 : i32
    %41 = arith.index_cast %c6_i32 : i32 to index
    %c0_22 = arith.constant 0 : index
    %c0_23 = arith.constant 0 : index
    %42 = vector.load %arg0[%41, %c0_22, %c0_23] : memref<8x2x32xf32, #tpu.memory_space<vmem>>, vector<1x2x32xf32>
    %43 = vector.shape_cast %42 : vector<1x2x32xf32> to vector<2x32xf32>
    %cst_24 = arith.constant dense<0.000000e+00> : vector<2x32xf32>
    %44 = tpu.matmul %40, %0, %cst_24 {dimension_numbers = #tpu.dot_dimension_numbers<[1], [0], [0], [1], [0, 0, 1, 1], [], []>} : vector<2x32xf32>, vector<32x32xf32>, vector<2x32xf32> -> vector<2x32xf32>
    %45 = arith.addf %43, %44 : vector<2x32xf32>
    %46 = math.tanh %45 : vector<2x32xf32>
    %c7_i32 = arith.constant 7 : i32
    %47 = arith.index_cast %c7_i32 : i32 to index
    %c0_25 = arith.constant 0 : index
    %c0_26 = arith.constant 0 : index
    %48 = vector.load %arg0[%47, %c0_25, %c0_26] : memref<8x2x32xf32, #tpu.memory_space<vmem>>, vector<1x2x32xf32>
    %49 = vector.shape_cast %48 : vector<1x2x32xf32> to vector<2x32xf32>
    %cst_27 = arith.constant dense<0.000000e+00> : vector<2x32xf32>
    %50 = tpu.matmul %46, %0, %cst_27 {dimension_numbers = #tpu.dot_dimension_numbers<[1], [0], [0], [1], [0, 0, 1, 1], [], []>} : vector<2x32xf32>, vector<32x32xf32>, vector<2x32xf32> -> vector<2x32xf32>
    %51 = arith.addf %49, %50 : vector<2x32xf32>
    %52 = math.tanh %51 : vector<2x32xf32>
    %c8_i32 = arith.constant 8 : i32
    %c0_i32_28 = arith.constant 0 : i32
    %cst_29 = arith.constant dense<0.000000e+00> : vector<2x32xf32>
    %53 = tpu.matmul %52, %0, %cst_29 {dimension_numbers = #tpu.dot_dimension_numbers<[1], [0], [0], [1], [0, 0, 1, 1], [], []>} : vector<2x32xf32>, vector<32x32xf32>, vector<2x32xf32> -> vector<2x32xf32>
    %54 = vector.broadcast %1 : vector<1x32xf32> to vector<2x32xf32>
    %55 = arith.addf %54, %53 : vector<2x32xf32>
    %56 = math.tanh %55 : vector<2x32xf32>
    %57 = arith.index_cast %c0_i32_28 : i32 to index
    %c0_30 = arith.constant 0 : index
    %c0_31 = arith.constant 0 : index
    %58 = vector.load %arg4[%57, %c0_30, %c0_31] : memref<4x2x32xf32, #tpu.memory_space<vmem>>, vector<1x2x32xf32>
    %59 = vector.shape_cast %58 : vector<1x2x32xf32> to vector<2x32xf32>
    %60 = vector.shape_cast %56 : vector<2x32xf32> to vector<1x2x32xf32>
    tpu.vector_store %arg4[%57, %c0_30, %c0_31], %60 {strides = array<i32>} : memref<4x2x32xf32, #tpu.memory_space<vmem>>, vector<1x2x32xf32>,
    %c1_i32_32 = arith.constant 1 : i32
    %cst_33 = arith.constant dense<0.000000e+00> : vector<2x32xf32>
    %61 = tpu.matmul %56, %0, %cst_33 {dimension_numbers = #tpu.dot_dimension_numbers<[1], [0], [0], [1], [0, 0, 1, 1], [], []>} : vector<2x32xf32>, vector<32x32xf32>, vector<2x32xf32> -> vector<2x32xf32>
    %62 = vector.broadcast %1 : vector<1x32xf32> to vector<2x32xf32>
    %63 = arith.addf %62, %61 : vector<2x32xf32>
    %64 = math.tanh %63 : vector<2x32xf32>
    %65 = arith.index_cast %c1_i32_32 : i32 to index
    %c0_34 = arith.constant 0 : index
    %c0_35 = arith.constant 0 : index
    %66 = vector.load %arg4[%65, %c0_34, %c0_35] : memref<4x2x32xf32, #tpu.memory_space<vmem>>, vector<1x2x32xf32>
    %67 = vector.shape_cast %66 : vector<1x2x32xf32> to vector<2x32xf32>
    %68 = vector.shape_cast %64 : vector<2x32xf32> to vector<1x2x32xf32>
    tpu.vector_store %arg4[%65, %c0_34, %c0_35], %68 {strides = array<i32>} : memref<4x2x32xf32, #tpu.memory_space<vmem>>, vector<1x2x32xf32>,
    %c2_i32_36 = arith.constant 2 : i32
    %cst_37 = arith.constant dense<0.000000e+00> : vector<2x32xf32>
    %69 = tpu.matmul %64, %0, %cst_37 {dimension_numbers = #tpu.dot_dimension_numbers<[1], [0], [0], [1], [0, 0, 1, 1], [], []>} : vector<2x32xf32>, vector<32x32xf32>, vector<2x32xf32> -> vector<2x32xf32>
    %70 = vector.broadcast %1 : vector<1x32xf32> to vector<2x32xf32>
    %71 = arith.addf %70, %69 : vector<2x32xf32>
    %72 = math.tanh %71 : vector<2x32xf32>
    %73 = arith.index_cast %c2_i32_36 : i32 to index
    %c0_38 = arith.constant 0 : index
    %c0_39 = arith.constant 0 : index
    %74 = vector.load %arg4[%73, %c0_38, %c0_39] : memref<4x2x32xf32, #tpu.memory_space<vmem>>, vector<1x2x32xf32>
    %75 = vector.shape_cast %74 : vector<1x2x32xf32> to vector<2x32xf32>
    %76 = vector.shape_cast %72 : vector<2x32xf32> to vector<1x2x32xf32>
    tpu.vector_store %arg4[%73, %c0_38, %c0_39], %76 {strides = array<i32>} : memref<4x2x32xf32, #tpu.memory_space<vmem>>, vector<1x2x32xf32>,
    %c3_i32_40 = arith.constant 3 : i32
    %cst_41 = arith.constant dense<0.000000e+00> : vector<2x32xf32>
    %77 = tpu.matmul %72, %0, %cst_41 {dimension_numbers = #tpu.dot_dimension_numbers<[1], [0], [0], [1], [0, 0, 1, 1], [], []>} : vector<2x32xf32>, vector<32x32xf32>, vector<2x32xf32> -> vector<2x32xf32>
    %78 = vector.broadcast %1 : vector<1x32xf32> to vector<2x32xf32>
    %79 = arith.addf %78, %77 : vector<2x32xf32>
    %80 = math.tanh %79 : vector<2x32xf32>
    %81 = arith.index_cast %c3_i32_40 : i32 to index
    %c0_42 = arith.constant 0 : index
    %c0_43 = arith.constant 0 : index
    %82 = vector.load %arg4[%81, %c0_42, %c0_43] : memref<4x2x32xf32, #tpu.memory_space<vmem>>, vector<1x2x32xf32>
    %83 = vector.shape_cast %82 : vector<1x2x32xf32> to vector<2x32xf32>
    %84 = vector.shape_cast %80 : vector<2x32xf32> to vector<1x2x32xf32>
    tpu.vector_store %arg4[%81, %c0_42, %c0_43], %84 {strides = array<i32>} : memref<4x2x32xf32, #tpu.memory_space<vmem>>, vector<1x2x32xf32>,
    %c4_i32_44 = arith.constant 4 : i32
    return
  }
}

</mosaic_0001>

<bundles_post_ra>
// kernel: tpu_custom_call.1
= control target key start
LH: loop header
LB: loop body
LE: loop exit
PB: predicated region body
PF: predicated region fallthrough
CT: control target
= control target key end

     0   :  { %9 = vsyncpa [#allocation3], 0  ;;  %s677_s0 = inlined_call_operand.hbm [shape: f32[8,2,32], index: 0, kind: input, shape index: {}]   ;;  %s678_s1 = inlined_call_operand.hbm [shape: f32[1,32], index: 1, kind: input, shape index: {}]   ;;  %s679_s2 = inlined_call_operand.hbm [shape: f32[32,32], index: 2, kind: input, shape index: {}]   ;;  %s680_s3 = inlined_call_operand.vmem [shape: f32[1,32], index: 3, kind: input, shape index: {}]   ;;  %s681_s4 = inlined_call_operand.hbm [shape: f32[4,2,32], index: 4, kind: output, shape index: {}]  }
   0x1   :  { %10 = vsyncpa [#allocation6], 0  ;;  %s30_s17 = sshll.u32 %s678_s1, 4  ;;  %s31_s17 = int_to_ptr.hbm [resolvable:$true] %s30_s17 }
   0x2   :  { %11 = vsyncpa [#allocation4], 0  ;;  %s565_s18 = smov [#allocation5]   ;;  %s16_s22 = sshll.u32 %s677_s0, 4  ;;  %s17_s22 = int_to_ptr.hbm [resolvable:$true] %s16_s22 }
   0x3   :  { %s32_s19 = sshll.u32 %s565_s18, 4  ;;  %s566_s23 = smov [#allocation2]   ;;  %s33_s19 = int_to_ptr.vmem [resolvable:$true] %s32_s19 }
   0x4   :  { %35 = dma.hbm_to_vmem [thread:$0]  %s31_s17, 16, %s33_s19, [#allocation6]  }
   0x5   :  { %s18_s24 = sshll.u32 %s566_s23, 4  ;;  %s567_s25 = smov 32   ;;  %s19_s24 = int_to_ptr.vmem [resolvable:$true] %s18_s24 }
   0x6   :  { %s568_s26 = smov 2   ;;  %s40_s28 = sshll.u32 %s679_s2, 4  ;;  %s41_s28 = int_to_ptr.hbm [resolvable:$true] %s40_s28 }
   0x7   :  { %24 = dma.hbm_to_vmem [thread:$0]  %s17_s22, 256, %s19_s24, [#allocation3], %s567_s25, %s567_s25, %s568_s26  }
   0x8   :  { %s569_s29 = smov [#allocation7]   ;;  %s570_s0 = smov 128  }
   0x9   :  { %s42_s30 = sshll.u32 %s569_s29, 4  ;;  %s571_s5 = smov 8   ;;  %s43_s30 = int_to_ptr.vmem [resolvable:$true] %s42_s30 }
   0xa   :  { %48 = dma.hbm_to_vmem [thread:$0]  %s41_s28, 512, %s43_s30, [#allocation6], %s570_s0, %s570_s0, %s571_s5  }
   0xb   :  { %559 = dma.done.wait [#allocation3], 256  }
   0xc   :  { %560 = vsyncadd [#allocation3], 4294967040 }
   0xd   :  { %561 = dma.done.wait [#allocation6], 528  }
   0xe   :  { %562 = vsyncadd [#allocation6], 4294966768  ;;  %v610_v0 = vld [vmem:[#allocation7 + $0x18] sm:$0xff]  ;;  %v612_v1 = vld [vmem:[#allocation7 + $0x10] sm:$0xff]  ;;  %vm72_vm0 = vcmask 261120   ;;  %vm314_vm1 = vcmask 254976  }
   0xf   :  { %87 = vmatpush.msra.mxu0 %v610_v0  ;;  %114 = vmatpush.msra.mxu1 %v610_v0  ;;  %v616_v2 = vld [vmem:[#allocation7 + $0x8] sm:$0xff]  ;;  %v63_v3 = vld [vmem:[#allocation7] sm:$0xff]  ;;  %v437_v4 = vld [vmem:[#allocation5] ss:$0 sm:$0xff]  ;;  %s403_s10 = sshll.u32 %s681_s4, 4  ;;  %s404_s10 = int_to_ptr.hbm [resolvable:$true] %s403_s10 }
  0x10   :  { %141 = vmatpush.msra.mxu2 %v610_v0  ;;  %168 = vmatpush.msra.mxu3 %v610_v0  ;;  %v71_v5 = vld [vmem:[#allocation2] sm:$0x3]  ;;  %v98_v9 = vld [vmem:[#allocation2 + $0x2] sm:$0x3]  ;;  %v125_v13 = vld [vmem:[#allocation2 + $0x4] sm:$0x3] }
  0x11   :  { %88 = vmatpush.msra.mxu0 %v612_v1  ;;  %115 = vmatpush.msra.mxu1 %v612_v1  ;;  %v152_v17 = vld [vmem:[#allocation2 + $0x6] sm:$0x3]  ;;  %v179_v21 = vld [vmem:[#allocation2 + $0x8] sm:$0x3]  ;;  %v206_v25 = vld [vmem:[#allocation2 + $0xa] sm:$0x3] }
  0x12   :  { %142 = vmatpush.msra.mxu2 %v612_v1  ;;  %169 = vmatpush.msra.mxu3 %v612_v1  ;;  %v233_v29 = vld [vmem:[#allocation2 + $0xc] sm:$0x3]  ;;  %v260_v33 = vld [vmem:[#allocation2 + $0xe] sm:$0x3]  ;;  %v438_v37 = vld [vmem:[%s680_s3] ss:$0 sm:$0xff] }
  0x13   :  { %89 = vmatpush.msra.mxu0 %v616_v2  ;;  %116 = vmatpush.msra.mxu1 %v616_v2  ;;  %s572_s3 = smov [#allocation8]  }
  0x14   :  { %143 = vmatpush.msra.mxu2 %v616_v2  ;;  %170 = vmatpush.msra.mxu3 %v616_v2  ;;  %s401_s7 = sshll.u32 %s572_s3, 4  ;;  %s402_s7 = int_to_ptr.vmem [resolvable:$true] %s401_s7 }
  0x15   :  { %90 = vmatpush.msra.mxu0 %v63_v3  ;;  %117 = vmatpush.msra.mxu1 %v63_v3 }
  0x16   :  { %417 = vmatmul.msk.f32.vlgmr.msra.gmra.mxu0 %vm72_vm0, %v437_v4  ;;  %144 = vmatpush.msra.mxu2 %v63_v3 }
  0x17   :  { %171 = vmatpush.msra.mxu3 %v63_v3  ;;  %195 = vmatpush.msrb.mxu0 %v610_v0 }
  0x18   :  { %222 = vmatpush.msrb.mxu1 %v610_v0  ;;  %249 = vmatpush.msrb.mxu2 %v610_v0 }
  0x19   :  { %196 = vmatpush.msrb.mxu0 %v612_v1  ;;  %276 = vmatpush.msrb.mxu3 %v610_v0 }
  0x1a   :  { %223 = vmatpush.msrb.mxu1 %v612_v1  ;;  %250 = vmatpush.msrb.mxu2 %v612_v1 }
  0x1b   :  { %197 = vmatpush.msrb.mxu0 %v616_v2  ;;  %277 = vmatpush.msrb.mxu3 %v612_v1 }
  0x1c   :  { %224 = vmatpush.msrb.mxu1 %v616_v2  ;;  %251 = vmatpush.msrb.mxu2 %v616_v2 }
  0x1d   :  { %198 = vmatpush.msrb.mxu0 %v63_v3  ;;  %278 = vmatpush.msrb.mxu3 %v616_v2 }
  0x1e   :  { %225 = vmatpush.msrb.mxu1 %v63_v3  ;;  %252 = vmatpush.msrb.mxu2 %v63_v3 }
  0x1f   :  { %279 = vmatpush.msrb.mxu3 %v63_v3  ;;  %301 = vmatpush.msra.mxu0 %v610_v0 }
  0x21   :  { %302 = vmatpush.msra.mxu0 %v612_v1 }
  0x23   :  { %303 = vmatpush.msra.mxu0 %v616_v2 }
  0x25   :  { %304 = vmatpush.msra.mxu0 %v63_v3 }
  0x93   :  { %v92_v6 = vpop.f32.mrf.mxu0 }
  0x94   :  { %v95_v7 = vadd.f32 %v92_v6, %v71_v5 }
  0x96   :  { %439 = vtanh.f32 %v95_v7 }
  0x9c   :  { %v440_v8 = vpop.eup %439 }
  0x9d   :  { %418 = vmatmul.msk.f32.vlgmr.msra.gmra.mxu1 %vm72_vm0, %v440_v8 }
  0x9e   :  { %331 = vmatpush.msra.mxu1 %v610_v0 }
  0xa0   :  { %332 = vmatpush.msra.mxu1 %v612_v1 }
  0xa2   :  { %333 = vmatpush.msra.mxu1 %v616_v2 }
  0xa4   :  { %334 = vmatpush.msra.mxu1 %v63_v3 }
 0x11a   :  { %v119_v10 = vpop.f32.mrf.mxu1 }
 0x11b   :  { %v122_v11 = vadd.f32 %v119_v10, %v98_v9 }
 0x11d   :  { %441 = vtanh.f32 %v122_v11 }
 0x123   :  { %v442_v12 = vpop.eup %441 }
 0x124   :  { %419 = vmatmul.msk.f32.vlgmr.msra.gmra.mxu2 %vm72_vm0, %v442_v12 }
 0x125   :  { %358 = vmatpush.msra.mxu2 %v610_v0 }
 0x127   :  { %359 = vmatpush.msra.mxu2 %v612_v1 }
 0x129   :  { %360 = vmatpush.msra.mxu2 %v616_v2 }
 0x12b   :  { %361 = vmatpush.msra.mxu2 %v63_v3 }
 0x1a7   :  { %v146_v14 = vpop.f32.mrf.mxu2 }
 0x1a8   :  { %v149_v15 = vadd.f32 %v146_v14, %v125_v13 }
 0x1aa   :  { %443 = vtanh.f32 %v149_v15 }
 0x1b0   :  { %v444_v16 = vpop.eup %443 }
 0x1b1   :  { %420 = vmatmul.msk.f32.vlgmr.msra.gmra.mxu3 %vm72_vm0, %v444_v16 }
 0x1b2   :  { %385 = vmatpush.msra.mxu3 %v610_v0 }
 0x1b4   :  { %386 = vmatpush.msra.mxu3 %v612_v1 }
 0x1b6   :  { %387 = vmatpush.msra.mxu3 %v616_v2 }
 0x1b8   :  { %388 = vmatpush.msra.mxu3 %v63_v3 }
 0x234   :  { %v173_v18 = vpop.f32.mrf.mxu3 }
 0x235   :  { %v176_v19 = vadd.f32 %v173_v18, %v152_v17 }
 0x237   :  { %445 = vtanh.f32 %v176_v19 }
 0x23d   :  { %v446_v20 = vpop.eup %445 }
 0x23e   :  { %421 = vmatmul.msk.f32.vlgmr.msrb.gmra.mxu0 %vm72_vm0, %v446_v20 }
 0x2bb   :  { %v200_v22 = vpop.f32.mrf.mxu0 }
 0x2bc   :  { %v203_v23 = vadd.f32 %v200_v22, %v179_v21 }
 0x2be   :  { %447 = vtanh.f32 %v203_v23 }
 0x2c4   :  { %v448_v24 = vpop.eup %447 }
 0x2c5   :  { %422 = vmatmul.msk.f32.vlgmr.msrb.gmra.mxu1 %vm72_vm0, %v448_v24 }
 0x342   :  { %v227_v26 = vpop.f32.mrf.mxu1 }
 0x343   :  { %v230_v27 = vadd.f32 %v227_v26, %v206_v25 }
 0x345   :  { %449 = vtanh.f32 %v230_v27 }
 0x34b   :  { %v450_v28 = vpop.eup %449 }
 0x34c   :  { %423 = vmatmul.msk.f32.vlgmr.msrb.gmra.mxu2 %vm72_vm0, %v450_v28 }
 0x3cf   :  { %v254_v30 = vpop.f32.mrf.mxu2 }
 0x3d0   :  { %v257_v31 = vadd.f32 %v254_v30, %v233_v29 }
 0x3d2   :  { %451 = vtanh.f32 %v257_v31 }
 0x3d8   :  { %v452_v32 = vpop.eup %451 }
 0x3d9   :  { %424 = vmatmul.msk.f32.vlgmr.msrb.gmra.mxu3 %vm72_vm0, %v452_v32 }
 0x45c   :  { %v281_v34 = vpop.f32.mrf.mxu3 }
 0x45d   :  { %v284_v35 = vadd.f32 %v281_v34, %v260_v33 }
 0x45f   :  { %453 = vtanh.f32 %v284_v35 }
 0x465   :  { %v454_v36 = vpop.eup %453 }
 0x466   :  { %425 = vmatmul.msk.f32.vlgmr.msra.gmra.mxu0 %vm72_vm0, %v454_v36 }
 0x4e3   :  { %v306_v38 = vpop.f32.mrf.mxu0 }
 0x4e4   :  { %v312_v39 = vadd.f32 %v438_v37, %v306_v38 }
 0x4e6   :  { %455 = vtanh.f32 %v312_v39 }
 0x4ec   :  { %v456_v40 = vpop.eup %455 }
 0x4ed   :  { %426 = vmatmul.msk.f32.vlgmr.msra.gmra.mxu1 %vm72_vm0, %v456_v40  ;;  %315 = vst.msk [vmem:[#allocation8] sm:$0x3] %vm314_vm1, %v456_v40 }
 0x56a   :  { %v336_v41 = vpop.f32.mrf.mxu1 }
 0x56b   :  { %v339_v42 = vadd.f32 %v438_v37, %v336_v41 }
 0x56d   :  { %457 = vtanh.f32 %v339_v42 }
 0x573   :  { %v458_v43 = vpop.eup %457 }
 0x574   :  { %427 = vmatmul.msk.f32.vlgmr.msra.gmra.mxu2 %vm72_vm0, %v458_v43  ;;  %342 = vst.msk [vmem:[#allocation8 + $0x2] sm:$0x3] %vm314_vm1, %v458_v43 }
 0x5f7   :  { %v363_v44 = vpop.f32.mrf.mxu2 }
 0x5f8   :  { %v366_v45 = vadd.f32 %v438_v37, %v363_v44 }
 0x5fa   :  { %459 = vtanh.f32 %v366_v45 }
 0x600   :  { %v460_v46 = vpop.eup %459 }
 0x601   :  { %428 = vmatmul.msk.f32.vlgmr.msra.gmra.mxu3 %vm72_vm0, %v460_v46  ;;  %369 = vst.msk [vmem:[#allocation8 + $0x4] sm:$0x3] %vm314_vm1, %v460_v46 }
 0x684   :  { %v390_v47 = vpop.f32.mrf.mxu3 }
 0x685   :  { %v393_v48 = vadd.f32 %v438_v37, %v390_v47 }
 0x687   :  { %461 = vtanh.f32 %v393_v48 }
 0x68d   :  { %v462_v49 = vpop.eup %461 }
 0x68e   :  { %396 = vst.msk [vmem:[#allocation8 + $0x6] sm:$0x3] %vm314_vm1, %v462_v49 }
 0x68f   :  { %409 = dma.vmem_to_hbm [thread:$0]  %s402_s7, 128, %s404_s10, [#allocation4], %s567_s25, %s567_s25, %s568_s26  }
 0x690   :  { %563 = dma.done.wait [#allocation4], 128  }
 0x691   :  { %564 = vsyncadd [#allocation4], 4294967168 }
 0x692   :  { %414 = vsyncpa [#allocation3], 1 }
 0x693   :  { %415 = vsyncpa [#allocation6], 1 }
 0x694   :  { %416 = vsyncpa [#allocation4], 1 }

</bundles_post_ra>
